<compile_context>
chip_gen: v6e
topology: v6e:2x2x1
jax: 0.10.0
libtpu: 0.0.40
codegen_flags: <defaults>
</compile_context>

<pallas_src>
import jax
import jax.numpy as jnp
from jax.experimental import pallas as pl
from jax.experimental.pallas import tpu as pltpu

_LANE = 128


def _conv1x1_kernel(w_ref, b_ref, x_ref, o_ref):
    """Pointwise conv over channels on one (batch, row-tile) block.

    w_ref: SMEM (C_out, C_in) f32 scalars
    b_ref: SMEM (C_out,)      f32 scalars
    x_ref: VMEM (1, C_in,  ROWS, 128)  -- spatial as dense (ROWS, 128) slabs
    o_ref: VMEM (1, C_out, ROWS, 128)
    """
    c_in = x_ref.shape[1]
    c_out = o_ref.shape[1]

    # Load each input channel once as a sublane+lane dense (ROWS, 128) slab.
    xs = [x_ref[0, ci].astype(jnp.float32) for ci in range(c_in)]

    # Unrolled broadcast-FMA over channels on the VPU (C_in=4/C_out=8 is far
    # too small for the MXU; an (8,4)x(4,S) dot would pad to ~1% utilization).
    for co in range(c_out):
        acc = xs[0] * w_ref[co, 0] + b_ref[co]
        for ci in range(1, c_in):
            acc = acc + xs[ci] * w_ref[co, ci]
        # Dense (ROWS, 128) store -> unmasked vst (no sublane-masked partials).
        o_ref[0, co] = acc.astype(o_ref.dtype)


def _pick_rows(c_in, c_out, r_total, itemsize, budget_bytes=8 << 20):
    """Rows-of-128 per grid step, sized so the double-buffered in+out block
    footprint stays within `budget_bytes` (safe for v5e's 16 MiB default
    scoped VMEM and for v7x's 64 MiB physical with both TCs pipelining)."""
    per_row = (c_in + c_out) * _LANE * itemsize
    rows = budget_bytes // (2 * per_row)            # /2: double buffering
    rows = max(8, min(int(rows), 1024))             # cap at 128K elems / step
    if rows >= r_total:
        return r_total                              # full extent: always legal
    return max(8, (rows // 8) * 8)                  # sub-extent: multiple of 8


def resblock3d_forward(x_ncdhw, weight, bias):
    """x_ncdhw: (N, C_in, D, H, W); weight: (C_out, C_in, 1, 1, 1); bias: (C_out,)."""
    N, C_in, D, H, W = x_ncdhw.shape
    C_out = weight.shape[0]
    S = D * H * W

    w_mat = weight.reshape(C_out, C_in).astype(jnp.float32)
    b_vec = bias.reshape(C_out).astype(jnp.float32)

    # Spatial viewed as (rows, 128). Free reshape when S % 128 == 0; otherwise
    # a one-time pad (exact for a pointwise op; padded outputs sliced off).
    s_pad = pl.cdiv(S, _LANE) * _LANE
    x_ncs = x_ncdhw.reshape(N, C_in, S)
    if s_pad != S:
        x_ncs = jnp.pad(x_ncs, ((0, 0), (0, 0), (0, s_pad - S)))
    r_total = s_pad // _LANE
    x_tiled = x_ncs.reshape(N, C_in, r_total, _LANE)

    itemsize = jnp.dtype(x_ncdhw.dtype).itemsize
    rows = _pick_rows(C_in, C_out, r_total, itemsize)
    grid = (N, pl.cdiv(r_total, rows))

    out_tiled = pl.pallas_call(
        _conv1x1_kernel,
        out_shape=jax.ShapeDtypeStruct((N, C_out, r_total, _LANE), x_ncdhw.dtype),
        grid_spec=pltpu.PrefetchScalarGridSpec(
            num_scalar_prefetch=0,
            grid=grid,
            in_specs=[
                # Grid-invariant scalars live in SMEM: copied once, no per-step
                # DMA, no double-buffering cost.
                pl.BlockSpec(memory_space=pltpu.MemorySpace.SMEM),   # weight
                pl.BlockSpec(memory_space=pltpu.MemorySpace.SMEM),   # bias
                # Activation: (1, C_in, rows, 128) tiles, sublane+lane dense.
                pl.BlockSpec((1, C_in, rows, _LANE), lambda n, r: (n, 0, r, 0)),
            ],
            out_specs=pl.BlockSpec((1, C_out, rows, _LANE),
                                   lambda n, r: (n, 0, r, 0)),
        ),
        compiler_params=pltpu.CompilerParams(
            # Both grid axes independent -> shard across v7x's 2 TensorCores.
            dimension_semantics=("parallel", "parallel"),
        ),
    )(w_mat, b_vec, x_tiled)

    out = out_tiled.reshape(N, C_out, s_pad)
    if s_pad != S:
        out = out[:, :, :S]
    return out.reshape(N, C_out, D, H, W)


if __name__ == "__main__":
    # Small shapes consistent with the module: batch=2, in_chan=4, out_chan=8,
    # spatial (D, H, W) = (4, 8, 16)  ->  S = 512 = 4 rows of 128.
    N, C_in, C_out, D, H, W = 2, 4, 8, 4, 8, 16

    key = jax.random.PRNGKey(0)
    kx, kw, kb = jax.random.split(key, 3)

    x = jax.random.normal(kx, (N, C_in, D, H, W), dtype=jnp.float32)

    # Conv3d-shaped parameters: weight (C_out, C_in, 1, 1, 1), bias (C_out,).
    fan_in = C_in * 1 * 1 * 1
    bound = 1.0 / (fan_in ** 0.5)
    weight = jax.random.uniform(kw, (C_out, C_in, 1, 1, 1),
                                minval=-bound, maxval=bound, dtype=jnp.float32)
    bias = jax.random.uniform(kb, (C_out,),
                              minval=-bound, maxval=bound, dtype=jnp.float32)

    out = jax.block_until_ready(resblock3d_forward(x, weight, bias))

    # Reference check (pure JAX, same semantics as PyTorch Conv3d k=1).
    ref = jnp.einsum("oi,nidhw->nodhw", weight.reshape(C_out, C_in), x) + \
          bias.reshape(1, C_out, 1, 1, 1)
    assert out.shape == (N, C_out, D, H, W)
    assert jnp.allclose(out, ref, atol=1e-5, rtol=1e-5)

    print("KERNEL_OK")
</pallas_src>

<mosaic_0001>
module attributes {stable_mosaic.version = 11 : i64} {
  func.func @_conv1x1_kernel(%arg0: i32, %arg1: i32, %arg2: memref<8x4xf32, #tpu.memory_space<smem>>, %arg3: memref<8xf32, #tpu.memory_space<smem>>, %arg4: memref<1x4x4x128xf32, #tpu.memory_space<vmem>>, %arg5: memref<1x8x4x128xf32, #tpu.memory_space<vmem>>) attributes {dimension_semantics = [#tpu.dimension_semantics<parallel>, #tpu.dimension_semantics<parallel>], iteration_bounds = array<i64: 2, 1>, scalar_prefetch = 0 : i64, scratch_operands = 0 : i64, tpu.core_type = #tpu.core_type<tc>, window_params = [{transform_indices = @transform_0, window_bounds = array<i64: 8, 4>}, {transform_indices = @transform_1, window_bounds = array<i64: 8>}, {transform_indices = @transform_2, window_bounds = array<i64: 1, 4, 4, 128>}, {transform_indices = @transform_3, window_bounds = array<i64: 1, 8, 4, 128>}]} {
    %c0 = arith.constant 0 : index
    %c0_0 = arith.constant 0 : index
    %c0_1 = arith.constant 0 : index
    %c0_2 = arith.constant 0 : index
    %0 = vector.load %arg4[%c0, %c0_0, %c0_1, %c0_2] : memref<1x4x4x128xf32, #tpu.memory_space<vmem>>, vector<1x1x4x128xf32>
    %1 = vector.shape_cast %0 : vector<1x1x4x128xf32> to vector<4x128xf32>
    %c0_3 = arith.constant 0 : index
    %c1 = arith.constant 1 : index
    %c0_4 = arith.constant 0 : index
    %c0_5 = arith.constant 0 : index
    %2 = vector.load %arg4[%c0_3, %c1, %c0_4, %c0_5] : memref<1x4x4x128xf32, #tpu.memory_space<vmem>>, vector<1x1x4x128xf32>
    %3 = vector.shape_cast %2 : vector<1x1x4x128xf32> to vector<4x128xf32>
    %c0_6 = arith.constant 0 : index
    %c2 = arith.constant 2 : index
    %c0_7 = arith.constant 0 : index
    %c0_8 = arith.constant 0 : index
    %4 = vector.load %arg4[%c0_6, %c2, %c0_7, %c0_8] : memref<1x4x4x128xf32, #tpu.memory_space<vmem>>, vector<1x1x4x128xf32>
    %5 = vector.shape_cast %4 : vector<1x1x4x128xf32> to vector<4x128xf32>
    %c0_9 = arith.constant 0 : index
    %c3 = arith.constant 3 : index
    %c0_10 = arith.constant 0 : index
    %c0_11 = arith.constant 0 : index
    %6 = vector.load %arg4[%c0_9, %c3, %c0_10, %c0_11] : memref<1x4x4x128xf32, #tpu.memory_space<vmem>>, vector<1x1x4x128xf32>
    %7 = vector.shape_cast %6 : vector<1x1x4x128xf32> to vector<4x128xf32>
    %c0_12 = arith.constant 0 : index
    %c0_13 = arith.constant 0 : index
    %8 = memref.load %arg2[%c0_12, %c0_13] : memref<8x4xf32, #tpu.memory_space<smem>>
    %9 = vector.broadcast %8 : f32 to vector<4x128xf32>
    %10 = arith.mulf %1, %9 : vector<4x128xf32>
    %c0_14 = arith.constant 0 : index
    %11 = memref.load %arg3[%c0_14] : memref<8xf32, #tpu.memory_space<smem>>
    %12 = vector.broadcast %11 : f32 to vector<4x128xf32>
    %13 = arith.addf %10, %12 : vector<4x128xf32>
    %c0_15 = arith.constant 0 : index
    %c1_16 = arith.constant 1 : index
    %14 = memref.load %arg2[%c0_15, %c1_16] : memref<8x4xf32, #tpu.memory_space<smem>>
    %15 = vector.broadcast %14 : f32 to vector<4x128xf32>
    %16 = arith.mulf %3, %15 : vector<4x128xf32>
    %17 = arith.addf %13, %16 : vector<4x128xf32>
    %c0_17 = arith.constant 0 : index
    %c2_18 = arith.constant 2 : index
    %18 = memref.load %arg2[%c0_17, %c2_18] : memref<8x4xf32, #tpu.memory_space<smem>>
    %19 = vector.broadcast %18 : f32 to vector<4x128xf32>
    %20 = arith.mulf %5, %19 : vector<4x128xf32>
    %21 = arith.addf %17, %20 : vector<4x128xf32>
    %c0_19 = arith.constant 0 : index
    %c3_20 = arith.constant 3 : index
    %22 = memref.load %arg2[%c0_19, %c3_20] : memref<8x4xf32, #tpu.memory_space<smem>>
    %23 = vector.broadcast %22 : f32 to vector<4x128xf32>
    %24 = arith.mulf %7, %23 : vector<4x128xf32>
    %25 = arith.addf %21, %24 : vector<4x128xf32>
    %c0_21 = arith.constant 0 : index
    %c0_22 = arith.constant 0 : index
    %c0_23 = arith.constant 0 : index
    %c0_24 = arith.constant 0 : index
    %26 = vector.load %arg5[%c0_21, %c0_22, %c0_23, %c0_24] : memref<1x8x4x128xf32, #tpu.memory_space<vmem>>, vector<1x1x4x128xf32>
    %27 = vector.shape_cast %26 : vector<1x1x4x128xf32> to vector<4x128xf32>
    %28 = vector.shape_cast %25 : vector<4x128xf32> to vector<1x1x4x128xf32>
    tpu.vector_store %arg5[%c0_21, %c0_22, %c0_23, %c0_24], %28 {strides = array<i32>} : memref<1x8x4x128xf32, #tpu.memory_space<vmem>>, vector<1x1x4x128xf32>,
    %c1_25 = arith.constant 1 : index
    %c0_26 = arith.constant 0 : index
    %29 = memref.load %arg2[%c1_25, %c0_26] : memref<8x4xf32, #tpu.memory_space<smem>>
    %30 = vector.broadcast %29 : f32 to vector<4x128xf32>
    %31 = arith.mulf %1, %30 : vector<4x128xf32>
    %c1_27 = arith.constant 1 : index
    %32 = memref.load %arg3[%c1_27] : memref<8xf32, #tpu.memory_space<smem>>
    %33 = vector.broadcast %32 : f32 to vector<4x128xf32>
    %34 = arith.addf %31, %33 : vector<4x128xf32>
    %c1_28 = arith.constant 1 : index
    %c1_29 = arith.constant 1 : index
    %35 = memref.load %arg2[%c1_28, %c1_29] : memref<8x4xf32, #tpu.memory_space<smem>>
    %36 = vector.broadcast %35 : f32 to vector<4x128xf32>
    %37 = arith.mulf %3, %36 : vector<4x128xf32>
    %38 = arith.addf %34, %37 : vector<4x128xf32>
    %c1_30 = arith.constant 1 : index
    %c2_31 = arith.constant 2 : index
    %39 = memref.load %arg2[%c1_30, %c2_31] : memref<8x4xf32, #tpu.memory_space<smem>>
    %40 = vector.broadcast %39 : f32 to vector<4x128xf32>
    %41 = arith.mulf %5, %40 : vector<4x128xf32>
    %42 = arith.addf %38, %41 : vector<4x128xf32>
    %c1_32 = arith.constant 1 : index
    %c3_33 = arith.constant 3 : index
    %43 = memref.load %arg2[%c1_32, %c3_33] : memref<8x4xf32, #tpu.memory_space<smem>>
    %44 = vector.broadcast %43 : f32 to vector<4x128xf32>
    %45 = arith.mulf %7, %44 : vector<4x128xf32>
    %46 = arith.addf %42, %45 : vector<4x128xf32>
    %c0_34 = arith.constant 0 : index
    %c1_35 = arith.constant 1 : index
    %c0_36 = arith.constant 0 : index
    %c0_37 = arith.constant 0 : index
    %47 = vector.load %arg5[%c0_34, %c1_35, %c0_36, %c0_37] : memref<1x8x4x128xf32, #tpu.memory_space<vmem>>, vector<1x1x4x128xf32>
    %48 = vector.shape_cast %47 : vector<1x1x4x128xf32> to vector<4x128xf32>
    %49 = vector.shape_cast %46 : vector<4x128xf32> to vector<1x1x4x128xf32>
    tpu.vector_store %arg5[%c0_34, %c1_35, %c0_36, %c0_37], %49 {strides = array<i32>} : memref<1x8x4x128xf32, #tpu.memory_space<vmem>>, vector<1x1x4x128xf32>,
    %c2_38 = arith.constant 2 : index
    %c0_39 = arith.constant 0 : index
    %50 = memref.load %arg2[%c2_38, %c0_39] : memref<8x4xf32, #tpu.memory_space<smem>>
    %51 = vector.broadcast %50 : f32 to vector<4x128xf32>
    %52 = arith.mulf %1, %51 : vector<4x128xf32>
    %c2_40 = arith.constant 2 : index
    %53 = memref.load %arg3[%c2_40] : memref<8xf32, #tpu.memory_space<smem>>
    %54 = vector.broadcast %53 : f32 to vector<4x128xf32>
    %55 = arith.addf %52, %54 : vector<4x128xf32>
    %c2_41 = arith.constant 2 : index
    %c1_42 = arith.constant 1 : index
    %56 = memref.load %arg2[%c2_41, %c1_42] : memref<8x4xf32, #tpu.memory_space<smem>>
    %57 = vector.broadcast %56 : f32 to vector<4x128xf32>
    %58 = arith.mulf %3, %57 : vector<4x128xf32>
    %59 = arith.addf %55, %58 : vector<4x128xf32>
    %c2_43 = arith.constant 2 : index
    %c2_44 = arith.constant 2 : index
    %60 = memref.load %arg2[%c2_43, %c2_44] : memref<8x4xf32, #tpu.memory_space<smem>>
    %61 = vector.broadcast %60 : f32 to vector<4x128xf32>
    %62 = arith.mulf %5, %61 : vector<4x128xf32>
    %63 = arith.addf %59, %62 : vector<4x128xf32>
    %c2_45 = arith.constant 2 : index
    %c3_46 = arith.constant 3 : index
    %64 = memref.load %arg2[%c2_45, %c3_46] : memref<8x4xf32, #tpu.memory_space<smem>>
    %65 = vector.broadcast %64 : f32 to vector<4x128xf32>
    %66 = arith.mulf %7, %65 : vector<4x128xf32>
    %67 = arith.addf %63, %66 : vector<4x128xf32>
    %c0_47 = arith.constant 0 : index
    %c2_48 = arith.constant 2 : index
    %c0_49 = arith.constant 0 : index
    %c0_50 = arith.constant 0 : index
    %68 = vector.load %arg5[%c0_47, %c2_48, %c0_49, %c0_50] : memref<1x8x4x128xf32, #tpu.memory_space<vmem>>, vector<1x1x4x128xf32>
    %69 = vector.shape_cast %68 : vector<1x1x4x128xf32> to vector<4x128xf32>
    %70 = vector.shape_cast %67 : vector<4x128xf32> to vector<1x1x4x128xf32>
    tpu.vector_store %arg5[%c0_47, %c2_48, %c0_49, %c0_50], %70 {strides = array<i32>} : memref<1x8x4x128xf32, #tpu.memory_space<vmem>>, vector<1x1x4x128xf32>,
    %c3_51 = arith.constant 3 : index
    %c0_52 = arith.constant 0 : index
    %71 = memref.load %arg2[%c3_51, %c0_52] : memref<8x4xf32, #tpu.memory_space<smem>>
    %72 = vector.broadcast %71 : f32 to vector<4x128xf32>
    %73 = arith.mulf %1, %72 : vector<4x128xf32>
    %c3_53 = arith.constant 3 : index
    %74 = memref.load %arg3[%c3_53] : memref<8xf32, #tpu.memory_space<smem>>
    %75 = vector.broadcast %74 : f32 to vector<4x128xf32>
    %76 = arith.addf %73, %75 : vector<4x128xf32>
    %c3_54 = arith.constant 3 : index
    %c1_55 = arith.constant 1 : index
    %77 = memref.load %arg2[%c3_54, %c1_55] : memref<8x4xf32, #tpu.memory_space<smem>>
    %78 = vector.broadcast %77 : f32 to vector<4x128xf32>
    %79 = arith.mulf %3, %78 : vector<4x128xf32>
    %80 = arith.addf %76, %79 : vector<4x128xf32>
    %c3_56 = arith.constant 3 : index
    %c2_57 = arith.constant 2 : index
    %81 = memref.load %arg2[%c3_56, %c2_57] : memref<8x4xf32, #tpu.memory_space<smem>>
    %82 = vector.broadcast %81 : f32 to vector<4x128xf32>
    %83 = arith.mulf %5, %82 : vector<4x128xf32>
    %84 = arith.addf %80, %83 : vector<4x128xf32>
    %c3_58 = arith.constant 3 : index
    %c3_59 = arith.constant 3 : index
    %85 = memref.load %arg2[%c3_58, %c3_59] : memref<8x4xf32, #tpu.memory_space<smem>>
    %86 = vector.broadcast %85 : f32 to vector<4x128xf32>
    %87 = arith.mulf %7, %86 : vector<4x128xf32>
    %88 = arith.addf %84, %87 : vector<4x128xf32>
    %c0_60 = arith.constant 0 : index
    %c3_61 = arith.constant 3 : index
    %c0_62 = arith.constant 0 : index
    %c0_63 = arith.constant 0 : index
    %89 = vector.load %arg5[%c0_60, %c3_61, %c0_62, %c0_63] : memref<1x8x4x128xf32, #tpu.memory_space<vmem>>, vector<1x1x4x128xf32>
    %90 = vector.shape_cast %89 : vector<1x1x4x128xf32> to vector<4x128xf32>
    %91 = vector.shape_cast %88 : vector<4x128xf32> to vector<1x1x4x128xf32>
    tpu.vector_store %arg5[%c0_60, %c3_61, %c0_62, %c0_63], %91 {strides = array<i32>} : memref<1x8x4x128xf32, #tpu.memory_space<vmem>>, vector<1x1x4x128xf32>,
    %c4 = arith.constant 4 : index
    %c0_64 = arith.constant 0 : index
    %92 = memref.load %arg2[%c4, %c0_64] : memref<8x4xf32, #tpu.memory_space<smem>>
    %93 = vector.broadcast %92 : f32 to vector<4x128xf32>
    %94 = arith.mulf %1, %93 : vector<4x128xf32>
    %c4_65 = arith.constant 4 : index
    %95 = memref.load %arg3[%c4_65] : memref<8xf32, #tpu.memory_space<smem>>
    %96 = vector.broadcast %95 : f32 to vector<4x128xf32>
    %97 = arith.addf %94, %96 : vector<4x128xf32>
    %c4_66 = arith.constant 4 : index
    %c1_67 = arith.constant 1 : index
    %98 = memref.load %arg2[%c4_66, %c1_67] : memref<8x4xf32, #tpu.memory_space<smem>>
    %99 = vector.broadcast %98 : f32 to vector<4x128xf32>
    %100 = arith.mulf %3, %99 : vector<4x128xf32>
    %101 = arith.addf %97, %100 : vector<4x128xf32>
    %c4_68 = arith.constant 4 : index
    %c2_69 = arith.constant 2 : index
    %102 = memref.load %arg2[%c4_68, %c2_69] : memref<8x4xf32, #tpu.memory_space<smem>>
    %103 = vector.broadcast %102 : f32 to vector<4x128xf32>
    %104 = arith.mulf %5, %103 : vector<4x128xf32>
    %105 = arith.addf %101, %104 : vector<4x128xf32>
    %c4_70 = arith.constant 4 : index
    %c3_71 = arith.constant 3 : index
    %106 = memref.load %arg2[%c4_70, %c3_71] : memref<8x4xf32, #tpu.memory_space<smem>>
    %107 = vector.broadcast %106 : f32 to vector<4x128xf32>
    %108 = arith.mulf %7, %107 : vector<4x128xf32>
    %109 = arith.addf %105, %108 : vector<4x128xf32>
    %c0_72 = arith.constant 0 : index
    %c4_73 = arith.constant 4 : index
    %c0_74 = arith.constant 0 : index
    %c0_75 = arith.constant 0 : index
    %110 = vector.load %arg5[%c0_72, %c4_73, %c0_74, %c0_75] : memref<1x8x4x128xf32, #tpu.memory_space<vmem>>, vector<1x1x4x128xf32>
    %111 = vector.shape_cast %110 : vector<1x1x4x128xf32> to vector<4x128xf32>
    %112 = vector.shape_cast %109 : vector<4x128xf32> to vector<1x1x4x128xf32>
    tpu.vector_store %arg5[%c0_72, %c4_73, %c0_74, %c0_75], %112 {strides = array<i32>} : memref<1x8x4x128xf32, #tpu.memory_space<vmem>>, vector<1x1x4x128xf32>,
    %c5 = arith.constant 5 : index
    %c0_76 = arith.constant 0 : index
    %113 = memref.load %arg2[%c5, %c0_76] : memref<8x4xf32, #tpu.memory_space<smem>>
    %114 = vector.broadcast %113 : f32 to vector<4x128xf32>
    %115 = arith.mulf %1, %114 : vector<4x128xf32>
    %c5_77 = arith.constant 5 : index
    %116 = memref.load %arg3[%c5_77] : memref<8xf32, #tpu.memory_space<smem>>
    %117 = vector.broadcast %116 : f32 to vector<4x128xf32>
    %118 = arith.addf %115, %117 : vector<4x128xf32>
    %c5_78 = arith.constant 5 : index
    %c1_79 = arith.constant 1 : index
    %119 = memref.load %arg2[%c5_78, %c1_79] : memref<8x4xf32, #tpu.memory_space<smem>>
    %120 = vector.broadcast %119 : f32 to vector<4x128xf32>
    %121 = arith.mulf %3, %120 : vector<4x128xf32>
    %122 = arith.addf %118, %121 : vector<4x128xf32>
    %c5_80 = arith.constant 5 : index
    %c2_81 = arith.constant 2 : index
    %123 = memref.load %arg2[%c5_80, %c2_81] : memref<8x4xf32, #tpu.memory_space<smem>>
    %124 = vector.broadcast %123 : f32 to vector<4x128xf32>
    %125 = arith.mulf %5, %124 : vector<4x128xf32>
    %126 = arith.addf %122, %125 : vector<4x128xf32>
    %c5_82 = arith.constant 5 : index
    %c3_83 = arith.constant 3 : index
    %127 = memref.load %arg2[%c5_82, %c3_83] : memref<8x4xf32, #tpu.memory_space<smem>>
    %128 = vector.broadcast %127 : f32 to vector<4x128xf32>
    %129 = arith.mulf %7, %128 : vector<4x128xf32>
    %130 = arith.addf %126, %129 : vector<4x128xf32>
    %c0_84 = arith.constant 0 : index
    %c5_85 = arith.constant 5 : index
    %c0_86 = arith.constant 0 : index
    %c0_87 = arith.constant 0 : index
    %131 = vector.load %arg5[%c0_84, %c5_85, %c0_86, %c0_87] : memref<1x8x4x128xf32, #tpu.memory_space<vmem>>, vector<1x1x4x128xf32>
    %132 = vector.shape_cast %131 : vector<1x1x4x128xf32> to vector<4x128xf32>
    %133 = vector.shape_cast %130 : vector<4x128xf32> to vector<1x1x4x128xf32>
    tpu.vector_store %arg5[%c0_84, %c5_85, %c0_86, %c0_87], %133 {strides = array<i32>} : memref<1x8x4x128xf32, #tpu.memory_space<vmem>>, vector<1x1x4x128xf32>,
    %c6 = arith.constant 6 : index
    %c0_88 = arith.constant 0 : index
    %134 = memref.load %arg2[%c6, %c0_88] : memref<8x4xf32, #tpu.memory_space<smem>>
    %135 = vector.broadcast %134 : f32 to vector<4x128xf32>
    %136 = arith.mulf %1, %135 : vector<4x128xf32>
    %c6_89 = arith.constant 6 : index
    %137 = memref.load %arg3[%c6_89] : memref<8xf32, #tpu.memory_space<smem>>
    %138 = vector.broadcast %137 : f32 to vector<4x128xf32>
    %139 = arith.addf %136, %138 : vector<4x128xf32>
    %c6_90 = arith.constant 6 : index
    %c1_91 = arith.constant 1 : index
    %140 = memref.load %arg2[%c6_90, %c1_91] : memref<8x4xf32, #tpu.memory_space<smem>>
    %141 = vector.broadcast %140 : f32 to vector<4x128xf32>
    %142 = arith.mulf %3, %141 : vector<4x128xf32>
    %143 = arith.addf %139, %142 : vector<4x128xf32>
    %c6_92 = arith.constant 6 : index
    %c2_93 = arith.constant 2 : index
    %144 = memref.load %arg2[%c6_92, %c2_93] : memref<8x4xf32, #tpu.memory_space<smem>>
    %145 = vector.broadcast %144 : f32 to vector<4x128xf32>
    %146 = arith.mulf %5, %145 : vector<4x128xf32>
    %147 = arith.addf %143, %146 : vector<4x128xf32>
    %c6_94 = arith.constant 6 : index
    %c3_95 = arith.constant 3 : index
    %148 = memref.load %arg2[%c6_94, %c3_95] : memref<8x4xf32, #tpu.memory_space<smem>>
    %149 = vector.broadcast %148 : f32 to vector<4x128xf32>
    %150 = arith.mulf %7, %149 : vector<4x128xf32>
    %151 = arith.addf %147, %150 : vector<4x128xf32>
    %c0_96 = arith.constant 0 : index
    %c6_97 = arith.constant 6 : index
    %c0_98 = arith.constant 0 : index
    %c0_99 = arith.constant 0 : index
    %152 = vector.load %arg5[%c0_96, %c6_97, %c0_98, %c0_99] : memref<1x8x4x128xf32, #tpu.memory_space<vmem>>, vector<1x1x4x128xf32>
    %153 = vector.shape_cast %152 : vector<1x1x4x128xf32> to vector<4x128xf32>
    %154 = vector.shape_cast %151 : vector<4x128xf32> to vector<1x1x4x128xf32>
    tpu.vector_store %arg5[%c0_96, %c6_97, %c0_98, %c0_99], %154 {strides = array<i32>} : memref<1x8x4x128xf32, #tpu.memory_space<vmem>>, vector<1x1x4x128xf32>,
    %c7 = arith.constant 7 : index
    %c0_100 = arith.constant 0 : index
    %155 = memref.load %arg2[%c7, %c0_100] : memref<8x4xf32, #tpu.memory_space<smem>>
    %156 = vector.broadcast %155 : f32 to vector<4x128xf32>
    %157 = arith.mulf %1, %156 : vector<4x128xf32>
    %c7_101 = arith.constant 7 : index
    %158 = memref.load %arg3[%c7_101] : memref<8xf32, #tpu.memory_space<smem>>
    %159 = vector.broadcast %158 : f32 to vector<4x128xf32>
    %160 = arith.addf %157, %159 : vector<4x128xf32>
    %c7_102 = arith.constant 7 : index
    %c1_103 = arith.constant 1 : index
    %161 = memref.load %arg2[%c7_102, %c1_103] : memref<8x4xf32, #tpu.memory_space<smem>>
    %162 = vector.broadcast %161 : f32 to vector<4x128xf32>
    %163 = arith.mulf %3, %162 : vector<4x128xf32>
    %164 = arith.addf %160, %163 : vector<4x128xf32>
    %c7_104 = arith.constant 7 : index
    %c2_105 = arith.constant 2 : index
    %165 = memref.load %arg2[%c7_104, %c2_105] : memref<8x4xf32, #tpu.memory_space<smem>>
    %166 = vector.broadcast %165 : f32 to vector<4x128xf32>
    %167 = arith.mulf %5, %166 : vector<4x128xf32>
    %168 = arith.addf %164, %167 : vector<4x128xf32>
    %c7_106 = arith.constant 7 : index
    %c3_107 = arith.constant 3 : index
    %169 = memref.load %arg2[%c7_106, %c3_107] : memref<8x4xf32, #tpu.memory_space<smem>>
    %170 = vector.broadcast %169 : f32 to vector<4x128xf32>
    %171 = arith.mulf %7, %170 : vector<4x128xf32>
    %172 = arith.addf %168, %171 : vector<4x128xf32>
    %c0_108 = arith.constant 0 : index
    %c7_109 = arith.constant 7 : index
    %c0_110 = arith.constant 0 : index
    %c0_111 = arith.constant 0 : index
    %173 = vector.load %arg5[%c0_108, %c7_109, %c0_110, %c0_111] : memref<1x8x4x128xf32, #tpu.memory_space<vmem>>, vector<1x1x4x128xf32>
    %174 = vector.shape_cast %173 : vector<1x1x4x128xf32> to vector<4x128xf32>
    %175 = vector.shape_cast %172 : vector<4x128xf32> to vector<1x1x4x128xf32>
    tpu.vector_store %arg5[%c0_108, %c7_109, %c0_110, %c0_111], %175 {strides = array<i32>} : memref<1x8x4x128xf32, #tpu.memory_space<vmem>>, vector<1x1x4x128xf32>,
    return
  }
  func.func @transform_0(%arg0: i32, %arg1: i32) -> (i32, i32) {
    %c0_i32 = arith.constant 0 : i32
    %c0_i32_0 = arith.constant 0 : i32
    %c0_i32_1 = arith.constant 0 : i32
    return %c0_i32, %c0_i32_0 : i32, i32
  }
  func.func @transform_1(%arg0: i32, %arg1: i32) -> i32 {
    %c0_i32 = arith.constant 0 : i32
    %c0_i32_0 = arith.constant 0 : i32
    return %c0_i32 : i32
  }
  func.func @transform_2(%arg0: i32, %arg1: i32) -> (i32, i32, i32, i32) {
    %c0_i32 = arith.constant 0 : i32
    %c0_i32_0 = arith.constant 0 : i32
    %c0_i32_1 = arith.constant 0 : i32
    return %arg0, %c0_i32, %arg1, %c0_i32_0 : i32, i32, i32, i32
  }
  func.func @transform_3(%arg0: i32, %arg1: i32) -> (i32, i32, i32, i32) {
    %c0_i32 = arith.constant 0 : i32
    %c0_i32_0 = arith.constant 0 : i32
    %c0_i32_1 = arith.constant 0 : i32
    return %arg0, %c0_i32, %arg1, %c0_i32_0 : i32, i32, i32, i32
  }
}

</mosaic_0001>

<bundles_post_ra>
// kernel: tpu_custom_call.1
= control target key start
LH: loop header
LB: loop body
LE: loop exit
PB: predicated region body
PF: predicated region fallthrough
CT: control target
= control target key end

     0   :  { %s1091_s0 = inlined_call_operand.vmem [shape: f32[8,4], index: 0, kind: input, shape index: {}]   ;;  %s1092_s1 = inlined_call_operand.vmem [shape: f32[8], index: 1, kind: input, shape index: {}]   ;;  %s1093_s2 = inlined_call_operand.hbm [shape: f32[2,4,4,128], index: 2, kind: input, shape index: {}]   ;;  %s1094_s3 = inlined_call_operand.hbm [shape: f32[2,8,4,128], index: 3, kind: output, shape index: {}]  }
   0x1   :  { %1101 = sst [smem:[#allocation14_spill]] %s1091_s0 }
   0x2   :  { %8 = vsyncpa [#allocation5], 0 }
   0x3   :  { %9 = vsyncpa [#allocation7], 0 }
   0x4   :  { %10 = vsyncpa [#allocation3], 0 }
   0x5   :  { %12 = vsyncpa [#allocation3 + $0x1], 0 }
   0x6   :  { %13 = vsyncpa [#allocation4], 0 }
   0x7   :  { %15 = vsyncpa [#allocation4 + $0x1], 0  ;;  %s853_s12 = smov 0   ;;  %s855_s13 = smov 0  }
   0x8   :  { %s857_s14 = smov 0   ;;  %s859_s15 = smov 0  }
   0x9   :  { %s861_s16 = smov 0   ;;  %s863_s17 = smov 0  }
   0xa LB: > { %s521_s18 = sadd.s32 4294967295, %s823_s17   ;;  %s522_s19 = sadd.s32 4294967294, %s823_s17   ;;  %s823_s17 = sphi %s863_s17, %s21_s17   ;;  %s819_s16 = sphi %s861_s16, %s1122_s16   ;;  %s815_s15 = sphi %s859_s15, %s1121_s15   ;;  %s811_s14 = sphi %s857_s14, %s1120_s14   ;;  %s807_s13 = sphi %s855_s13, %s1119_s13   ;;  %s803_s12 = sphi %s853_s12, %s1118_s12  }
   0xb   : > { %s84_s20 = sadd.s32 1, %s811_s14  ;;  %p91_p0 = scmp.ne.s32.totalorder %s811_s14, %s807_s13 }
   0xc   : > { %p92_p1 = scmp.eq.s32.totalorder %s823_s17, 0  ;;  %p97_p2 = scmp.ne.s32.totalorder %s807_s13, %s803_s12 }
   0xd   : > { %p891_p3 = scmp.eq.s32.totalorder %s521_s18, 0  ;;  %p123_p4 = scmp.eq.s32.totalorder %s521_s18, 1 }
   0xe   : > { %p895_p5 = por %p92_p1, %p91_p0  ;;  %p129_p6 = scmp.eq.s32.totalorder %s522_s19, 1 }
   0xf   : > { %s1102_s21 = scalar_select %p891_p3, 1, 0 }
  0x10   : > { %p901_p7 = por %p891_p3, %p97_p2  ;;  %p905_p8 = por %p123_p4, %p91_p0 }
  0x11   : > { %p909_p9 = por %p129_p6, %p97_p2  ;;  %p523_p10 = scmp.ge.s32.totalorder %s823_s17, 1 }
  0x12   : > { %s1104_s23 = scalar_select %p901_p7, 1, 0 }
  0x13   : > { %s1105_s24 = scalar_select %p905_p8, 1, 0 }
  0x14   : > { %s1106_s25 = scalar_select %p909_p9, 1, 0 }
  0x15   : > { %p136_p11 = scmp.lt.s32.totalorder %s823_s17, 3  ;;  %s1107_s0 = sld [smem:[#allocation14_spill]] }
  0x16   : > { %p619_p0 = scmp.lt.s32.totalorder %s823_s17, 2  ;;  %s160_s5 = sshll.u32 %s1092_s1, 4  ;;  %s161_s5 = int_to_ptr.vmem [resolvable:$true] %s160_s5 }
  0x17   : > { %p918_p12 = pnand %p523_p10, %p136_p11 }
  0x18   : > { %p931_p2 = pnand %p619_p0, %p895_p5 }
  0x19   : > { %s1108_s29 = scalar_select %p918_p12, 1, 0 }
  0x1a   : > { %p602_p1 = pneg %p918_p12 }
  0x1b   : > { %s149_s28 = sshll.u32 %s1107_s0, 4  ;;  %s150_s28 = int_to_ptr.vmem [resolvable:$true] %s149_s28 }
  0x1c   : > { %s1109_s6 = scalar_select %p931_p2, 1, 0 }
  0x1d   : > { %p937_p4 = pnand %p602_p1, %p891_p3  ;;  %s677_s8 = scalar_lea.vmem %s150_s28, 128 }
  0x1e   : > { %p678_p6 = scmp.ne.s32.totalorder %s150_s28, %s677_s8  ;;  %p685_p9 = scmp.lt.s32.totalorder %s150_s28, %s150_s28 }
  0x1f   : > { %p679_p10 = pneg %p937_p4  ;;  %p686_p8 = scmp.lt.s32.totalorder %s677_s8, %s677_s8 }
  0x21   : > { %p680_p11 = pnand %p679_p10, %p678_p6  ;;  %p687_p7 = por %p686_p8, %p685_p9 }
  0x23   : > { %p681_p13 = pneg %p680_p11 }
  0x25   : > { %p688_p5 = pnand %p687_p7, %p681_p13 }
  0x27   : > { %691 = shalt.err (!%p688_p5)
}
  0x28   : > { %s825_s9 = smov [#allocation2]   ;;  %s692_s10 = scalar_lea.vmem %s161_s5, 16 }
  0x29   : > { %605 = dma.vmem_to_smem (!%p937_p4), %s150_s28, 128, %s825_s9, [#allocation5]  }
  0x2a   : > { %p693_p0 = scmp.ne.s32.totalorder %s161_s5, %s692_s10  ;;  %p700_p12 = scmp.lt.s32.totalorder %s161_s5, %s161_s5 }
  0x2b   : > { %p701_p2 = scmp.lt.s32.totalorder %s692_s10, %s692_s10 }
  0x2c   : > { %p695_p1 = pnand %p693_p0, %p679_p10 }
  0x2d   : > { %p702_p6 = por %p701_p2, %p700_p12 }
  0x2e   : > { %p696_p3 = pneg %p695_p1 }
  0x30   : > { %p703_p11 = pnand %p702_p6, %p696_p3 }
  0x32   : > { %706 = shalt.err (!%p703_p11)
}
  0x33   : > { %s826_s11 = smov [#allocation6]   ;;  %s33_s18 = sadd.s32 1, %s819_s16 }
  0x34   : > { %608 = dma.vmem_to_smem (!%p937_p4), %s161_s5, 16, %s826_s11, [#allocation7]  }
  0x35   : > { %s171_s19 = sand.u32 1, %s811_s14   ;;  %p35_p7 = scmp.ge.s32.totalorder %s33_s18, 2 }
  0x36   : > { %s527_s22 = sshll.u32 %s171_s19, 4  ;;  %s588_s26 = sshll.u32 %s819_s16, 8 }
  0x37   : > { %s1124_s18 = smov (%p35_p7, %s33_s18), 0  ;;  %s182_s30 = scalar_lea.hbm %s1093_s2, %s588_s26 }
  0x38   : > { %s79_s4 = ssub.s32 %s819_s16, %s1124_s18  ;;  %s175_s7 = scalar_lea.vmem [#allocation8], %s527_s22 }
  0x39   : > { %s183_s8 = sshll.u32 %s175_s7, 4  ;;  %p82_p3 = scmp.eq.s32.totalorder %s79_s4, 0  ;;  %s184_s8 = int_to_ptr.vmem [resolvable:$true] %s183_s8 }
  0x3a   : > { %s172_s5 = scalar_lea.sflag [#allocation3], %s171_s19  ;;  %p1111_p8 = scmp.ne.s32.totalorder %s1109_s6, 0 }
  0x3b   : > { %s960_s9 = scalar_select %p82_p3, %s811_s14, %s84_s20  }
  0x3c   : > { %p709_p9 = pneg %p1111_p8  ;;  %s720_s10 = scalar_lea.vmem %s184_s8, 256 }
  0x3d   : > { %p721_p12 = scmp.ne.s32.totalorder %s184_s8, %s720_s10  ;;  %s827_s11 = smov [#allocation8]  }
  0x3e   : > { %s725_s0 = sshll.u32 %s827_s11, 4  ;;  %s726_s0 = int_to_ptr.vmem [resolvable:$false] %s725_s0 }
  0x3f   : > { %p723_p13 = pnand %p721_p12, %p709_p9  ;;  %s727_s27 = scalar_lea.vmem %s726_s0, 512 }
  0x40   : > { %p728_p4 = scmp.lt.s32.totalorder %s184_s8, %s726_s0  ;;  %p729_p10 = scmp.lt.s32.totalorder %s727_s27, %s720_s10 }
  0x41   : > { %p724_p2 = pneg %p723_p13 }
  0x42   : > { %p730_p5 = por %p729_p10, %p728_p4 }
  0x44   : > { %p731_p0 = pnand %p730_p5, %p724_p2 }
  0x46   : > { %734 = shalt.err (!%p731_p0)
}
  0x47   : > { %s828_s22 = smov 64   ;;  %s829_s20 = smov 4  }
  0x48   : > { %612 = dma.hbm_to_vmem [thread:$0]  (!%p1111_p8), %s182_s30, 256, %s184_s8, %s172_s5, %s828_s22, %s828_s22, %s829_s20  }
  0x49   : > { %p1112_p1 = scmp.ne.s32.totalorder %s1108_s29, 0 }
  0x4a   : > { %p1113_p6 = scmp.ne.s32.totalorder (!%p1112_p1), %s1102_s21, 0 }
  0x4b   : > { %195 = sbr.rel (%p1112_p1) target bundleno = 155 (0x9b), region = 32 }
  0x50   : > { %786 = dma.done.wait (%p1113_p6), [#allocation5], 128  }
  0x51   : > { %788 = vsyncadd (%p1113_p6), [#allocation5], 4294967168 }
  0x52   : > { %790 = dma.done.wait (%p1113_p6), [#allocation7], 16  }
  0x53   : > { %792 = vsyncadd (%p1113_p6), [#allocation7], 4294967280  ;;  %s977_s0 = sand.u32 1, %s807_s13   ;;  %p1114_p11 = scmp.ne.s32.totalorder %s1104_s23, 0 }
  0x54   : > { %s533_s29 = sshll.u32 %s977_s0, 4  ;;  %s206_s6 = scalar_lea.sflag [#allocation3], %s977_s0 }
  0x55   : > { %s209_s19 = scalar_lea.vmem [#allocation8], %s533_s29 }
  0x56   : > { %794 = dma.done.wait (%p1114_p11), %s206_s6, 256  }
  0x57   : > { %796 = vsyncadd (%p1114_p11), %s206_s6, 4294967040 }
  0x58   : > { %214 = sfence }
  0x59   : > { %s240_s26 = sld [smem:[#allocation2]]  ;;  %v985_v0 = vld [vmem:[%s209_s19] sm:$0xf]  ;;  %v987_v1 = vld [vmem:[%s209_s19 + $0x4] sm:$0xf]  ;;  %s534_s27 = sshll.u32 %s977_s0, 5 }
  0x5a   : > { %s243_s28 = sld [smem:[#allocation6]]  ;;  %v989_v3 = vld [vmem:[%s209_s19 + $0x8] sm:$0xf]  ;;  %v992_v6 = vld [vmem:[%s209_s19 + $0xc] sm:$0xf]  ;;  %p1115_p3 = scmp.ne.s32.totalorder %s1105_s24, 0 }
  0x5b   : > { %s538_s30 = sld [smem:[#allocation2 + $0x1]] }
  0x5c   : > { %s539_s21 = sld [smem:[#allocation2 + $0x2]] }
  0x5d   : > { %s540_s4 = sld [smem:[#allocation2 + $0x3]] }
  0x5e   : > { %s541_s7 = sld [smem:[#allocation2 + $0x80]] }
  0x5f   : > { %v241_v2 = vstv %s240_s26  ;;  %s542_s8 = sld [smem:[#allocation6 + $0x1]] }
  0x60   : > { %v242_v4 = vmul.f32 %v241_v2, %v985_v0  ;;  %v244_v5 = vstv %s243_s28  ;;  %s543_s23 = sld [smem:[#allocation2 + $0x81]]  ;;  %s1002_s28 = scalar_lea.vmem [#allocation9], %s534_s27 }
  0x61   : > { %v247_v7 = vstv %s538_s30  ;;  %s544_s5 = sld [smem:[#allocation2 + $0x82]] }
  0x62   : > { %v245_v8 = vadd.f32 %v244_v5, %v242_v4  ;;  %v248_v9 = vmul.f32 %v987_v1, %v247_v7  ;;  %v251_v10 = vstv %s539_s21  ;;  %s545_s10 = sld [smem:[#allocation2 + $0x83]] }
  0x63   : > { %v252_v11 = vmul.f32 %v989_v3, %v251_v10  ;;  %v255_v12 = vstv %s540_s4  ;;  %s547_s11 = sld [smem:[#allocation2 + $0x100]] }
  0x64   : > { %v249_v13 = vadd.f32 %v248_v9, %v245_v8  ;;  %v256_v14 = vmul.f32 %v992_v6, %v255_v12  ;;  %v260_v15 = vstv %s541_s7  ;;  %s548_s22 = sld [smem:[#allocation6 + $0x2]] }
  0x65   : > { %v261_v16 = vmul.f32 %v260_v15, %v985_v0  ;;  %v263_v17 = vstv %s542_s8  ;;  %s549_s20 = sld [smem:[#allocation2 + $0x101]] }
  0x66   : > { %v253_v18 = vadd.f32 %v252_v11, %v249_v13  ;;  %v266_v19 = vstv %s543_s23  ;;  %s550_s29 = sld [smem:[#allocation2 + $0x102]] }
  0x67   : > { %v264_v20 = vadd.f32 %v263_v17, %v261_v16  ;;  %v267_v21 = vmul.f32 %v987_v1, %v266_v19  ;;  %v270_v22 = vstv %s544_s5  ;;  %s551_s6 = sld [smem:[#allocation2 + $0x103]] }
  0x68   : > { %v257_v23 = vadd.f32 %v256_v14, %v253_v18  ;;  %v271_v24 = vmul.f32 %v989_v3, %v270_v22  ;;  %v274_v25 = vstv %s545_s10  ;;  %s553_s19 = sld [smem:[#allocation2 + $0x180]] }
  0x69   : > { %v268_v26 = vadd.f32 %v267_v21, %v264_v20  ;;  %v275_v27 = vmul.f32 %v992_v6, %v274_v25  ;;  %v280_v28 = vstv %s547_s11  ;;  %s554_s26 = sld [smem:[#allocation6 + $0x3]] }
  0x6a   : > { %258 = vst [vmem:[%s1002_s28] sm:$0xf] %v257_v23  ;;  %v281_v29 = vmul.f32 %v280_v28, %v985_v0  ;;  %v283_v30 = vstv %s548_s22  ;;  %s555_s30 = sld [smem:[#allocation2 + $0x181]] }
  0x6b   : > { %v272_v31 = vadd.f32 %v271_v24, %v268_v26  ;;  %v286_v32 = vstv %s549_s20  ;;  %s556_s21 = sld [smem:[#allocation2 + $0x182]] }
  0x6c   : > { %v284_v33 = vadd.f32 %v283_v30, %v281_v29  ;;  %v287_v34 = vmul.f32 %v987_v1, %v286_v32  ;;  %v290_v35 = vstv %s550_s29  ;;  %s557_s4 = sld [smem:[#allocation2 + $0x183]] }
  0x6d   : > { %v276_v36 = vadd.f32 %v275_v27, %v272_v31  ;;  %v291_v37 = vmul.f32 %v989_v3, %v290_v35  ;;  %v294_v38 = vstv %s551_s6  ;;  %s559_s7 = sld [smem:[#allocation2 + $0x200]] }
  0x6e   : > { %v288_v39 = vadd.f32 %v287_v34, %v284_v33  ;;  %v295_v40 = vmul.f32 %v992_v6, %v294_v38  ;;  %v300_v41 = vstv %s553_s19  ;;  %s560_s8 = sld [smem:[#allocation6 + $0x4]] }
  0x6f   : > { %546 = vst [vmem:[%s1002_s28 + $0x4] sm:$0xf] %v276_v36  ;;  %v301_v42 = vmul.f32 %v300_v41, %v985_v0  ;;  %v303_v43 = vstv %s554_s26  ;;  %s561_s23 = sld [smem:[#allocation2 + $0x201]] }
  0x70   : > { %v292_v44 = vadd.f32 %v291_v37, %v288_v39  ;;  %v306_v45 = vstv %s555_s30  ;;  %s562_s5 = sld [smem:[#allocation2 + $0x202]] }
  0x71   : > { %v304_v46 = vadd.f32 %v303_v43, %v301_v42  ;;  %v307_v47 = vmul.f32 %v987_v1, %v306_v45  ;;  %v310_v48 = vstv %s556_s21  ;;  %s563_s10 = sld [smem:[#allocation2 + $0x203]] }
  0x72   : > { %v296_v49 = vadd.f32 %v295_v40, %v292_v44  ;;  %v311_v50 = vmul.f32 %v989_v3, %v310_v48  ;;  %v314_v51 = vstv %s557_s4  ;;  %s565_s11 = sld [smem:[#allocation2 + $0x280]] }
  0x73   : > { %v308_v52 = vadd.f32 %v307_v47, %v304_v46  ;;  %v315_v53 = vmul.f32 %v992_v6, %v314_v51  ;;  %v320_v54 = vstv %s559_s7  ;;  %s566_s27 = sld [smem:[#allocation6 + $0x5]] }
  0x74   : > { %552 = vst [vmem:[%s1002_s28 + $0x8] sm:$0xf] %v296_v49  ;;  %v321_v55 = vmul.f32 %v320_v54, %v985_v0  ;;  %v323_v56 = vstv %s560_s8  ;;  %s567_s22 = sld [smem:[#allocation2 + $0x281]] }
  0x75   : > { %v312_v57 = vadd.f32 %v311_v50, %v308_v52  ;;  %v326_v58 = vstv %s561_s23  ;;  %s568_s20 = sld [smem:[#allocation2 + $0x282]] }
  0x76   : > { %v324_v59 = vadd.f32 %v323_v56, %v321_v55  ;;  %v327_v60 = vmul.f32 %v987_v1, %v326_v58  ;;  %v330_v61 = vstv %s562_s5  ;;  %s569_s29 = sld [smem:[#allocation2 + $0x283]] }
  0x77   : > { %v316_v62 = vadd.f32 %v315_v53, %v312_v57  ;;  %v331_v63 = vmul.f32 %v989_v3, %v330_v61  ;;  %v334_v2 = vstv %s563_s10  ;;  %s571_s6 = sld [smem:[#allocation2 + $0x300]]  ;;  %s414_s10 = sshll.u32 %s1002_s28, 4  ;;  %s1037_s10 = int_to_ptr.vmem [resolvable:$true] %s414_s10 }
  0x78   : > { %v328_v4 = vadd.f32 %v327_v60, %v324_v59  ;;  %v335_v5 = vmul.f32 %v992_v6, %v334_v2  ;;  %v340_v7 = vstv %s565_s11  ;;  %s572_s19 = sld [smem:[#allocation6 + $0x6]]  ;;  %s589_s11 = sshll.u32 %s815_s15, 9 }
  0x79   : > { %558 = vst [vmem:[%s1002_s28 + $0xc] sm:$0xf] %v316_v62  ;;  %v341_v8 = vmul.f32 %v340_v7, %v985_v0  ;;  %v343_v9 = vstv %s566_s27  ;;  %s573_s26 = sld [smem:[#allocation2 + $0x301]]  ;;  %s830_s15 = smov [#allocation9]  }
  0x7a   : > { %v332_v10 = vadd.f32 %v331_v63, %v328_v4  ;;  %v346_v11 = vstv %s567_s22  ;;  %s574_s30 = sld [smem:[#allocation2 + $0x302]] }
  0x7b   : > { %v344_v12 = vadd.f32 %v343_v9, %v341_v8  ;;  %v347_v13 = vmul.f32 %v987_v1, %v346_v11  ;;  %v350_v14 = vstv %s568_s20  ;;  %s575_s21 = sld [smem:[#allocation2 + $0x303]]  ;;  %s1042_s20 = scalar_lea.hbm %s1094_s3, %s589_s11 }
  0x7c   : > { %v336_v15 = vadd.f32 %v335_v5, %v332_v10  ;;  %v351_v16 = vmul.f32 %v989_v3, %v350_v14  ;;  %v354_v17 = vstv %s569_s29  ;;  %s577_s4 = sld [smem:[#allocation2 + $0x380]]  ;;  %s400_s29 = scalar_lea.sflag [#allocation4], %s977_s0 }
  0x7d   : > { %v348_v18 = vadd.f32 %v347_v13, %v344_v12  ;;  %v355_v19 = vmul.f32 %v992_v6, %v354_v17  ;;  %v360_v20 = vstv %s571_s6  ;;  %s578_s7 = sld [smem:[#allocation6 + $0x7]]  ;;  %s735_s6 = scalar_lea.vmem %s1037_s10, 512 }
  0x7e   : > { %564 = vst [vmem:[%s1002_s28 + $0x10] sm:$0xf] %v336_v15  ;;  %v361_v21 = vmul.f32 %v360_v20, %v985_v0  ;;  %v363_v22 = vstv %s572_s19  ;;  %s579_s8 = sld [smem:[#allocation2 + $0x381]]  ;;  %p736_p7 = scmp.ne.s32.totalorder %s1037_s10, %s735_s6 }
  0x7f   : > { %v352_v23 = vadd.f32 %v351_v16, %v348_v18  ;;  %v366_v24 = vstv %s573_s26  ;;  %s580_s23 = sld [smem:[#allocation2 + $0x382]]  ;;  %s739_s19 = sshll.u32 %s830_s15, 4  ;;  %s740_s19 = int_to_ptr.vmem [resolvable:$false] %s739_s19 }
  0x80   : > { %v364_v25 = vadd.f32 %v363_v22, %v361_v21  ;;  %v367_v26 = vmul.f32 %v987_v1, %v366_v24  ;;  %v370_v27 = vstv %s574_s30  ;;  %s581_s5 = sld [smem:[#allocation2 + $0x383]]  ;;  %p737_p8 = pnand %p736_p7, %p1115_p3 }
  0x81   : > { %v356_v28 = vadd.f32 %v355_v19, %v352_v23  ;;  %v371_v29 = vmul.f32 %v989_v3, %v370_v27  ;;  %v374_v30 = vstv %s575_s21  ;;  %s741_s26 = scalar_lea.vmem %s740_s19, 1024  ;;  %p742_p12 = scmp.lt.s32.totalorder %s1037_s10, %s740_s19 }
  0x82   : > { %v368_v31 = vadd.f32 %v367_v26, %v364_v25  ;;  %v375_v32 = vmul.f32 %v992_v6, %v374_v30  ;;  %v380_v33 = vstv %s577_s4  ;;  %p738_p9 = pneg %p737_p8  ;;  %p743_p13 = scmp.lt.s32.totalorder %s741_s26, %s735_s6 }
  0x83   : > { %570 = vst [vmem:[%s1002_s28 + $0x14] sm:$0xf] %v356_v28  ;;  %v381_v34 = vmul.f32 %v380_v33, %v985_v0  ;;  %v383_v35 = vstv %s578_s7 }
  0x84   : > { %v372_v36 = vadd.f32 %v371_v29, %v368_v31  ;;  %v386_v37 = vstv %s579_s8  ;;  %p744_p2 = por %p743_p13, %p742_p12 }
  0x85   : > { %v384_v38 = vadd.f32 %v383_v35, %v381_v34  ;;  %v387_v39 = vmul.f32 %v987_v1, %v386_v37  ;;  %v390_v40 = vstv %s580_s23 }
  0x86   : > { %v376_v41 = vadd.f32 %v375_v32, %v372_v36  ;;  %v391_v42 = vmul.f32 %v989_v3, %v390_v40  ;;  %v394_v43 = vstv %s581_s5  ;;  %p745_p4 = pnand %p744_p2, %p738_p9 }
  0x87   : > { %v388_v44 = vadd.f32 %v387_v39, %v384_v38  ;;  %v395_v45 = vmul.f32 %v992_v6, %v394_v43 }
  0x88   : > { %576 = vst [vmem:[%s1002_s28 + $0x18] sm:$0xf] %v376_v41 }
  0x89   : > { %v392_v0 = vadd.f32 %v391_v42, %v388_v44 }
  0x8b   : > { %v396_v1 = vadd.f32 %v395_v45, %v392_v0 }
  0x8d   : > { %582 = vst [vmem:[%s1002_s28 + $0x1c] sm:$0xf] %v396_v1 }
  0x8e   : > { %748 = shalt.err (!%p745_p4)
}
  0x8f   : > { %s749_s28 = scalar_lea.hbm %s1042_s20, 512  ;;  %s753_s4 = scalar_lea.hbm %s1094_s3, 1024 }
  0x90   : > { %p750_p10 = scmp.ne.s32.totalorder %s1042_s20, %s749_s28  ;;  %p754_p1 = scmp.lt.s32.totalorder %s1042_s20, %s1094_s3 }
  0x91   : > { %p755_p6 = scmp.lt.s32.totalorder %s753_s4, %s749_s28 }
  0x92   : > { %p751_p5 = pnand %p750_p10, %p1115_p3 }
  0x93   : > { %p756_p11 = por %p755_p6, %p754_p1 }
  0x94   : > { %p752_p0 = pneg %p751_p5 }
  0x96   : > { %p757_p7 = pnand %p756_p11, %p752_p0 }
  0x98   : > { %760 = shalt.err (!%p757_p7)
}
  0x99   : > { %s831_s23 = smov 64   ;;  %s832_s5 = smov 4  }
  0x9a   : > { %600 = dma.vmem_to_hbm [thread:$0]  (%p1115_p3), %s1037_s10, 512, %s1042_s20, %s400_s29, %s831_s23, %s831_s23, %s832_s5  }
  0x9b PF: > { %s429_s11 = sand.u32 1, %s803_s12   ;;  %p1116_p8 = scmp.ne.s32.totalorder %s1106_s25, 0 }
  0x9c   : > { %p1117_p9 = scmp.ge.s32.totalorder %s823_s17, 2  ;;  %s430_s27 = scalar_lea.sflag [#allocation4], %s429_s11 }
  0x9e   : > { %p614_p12 = pnand %p1117_p9, %p1116_p8 }
  0xa0   : > { %p615_p13 = pneg %p614_p12 }
  0xa2   : > { %798 = dma.done.wait (%p615_p13), %s430_s27, 512  }
  0xa3   : > { %800 = vsyncadd (%p615_p13), %s430_s27, 4294966784  ;;  %s21_s17 = sadd.s32 1, %s823_s17   ;;  %s1118_s12 = smov %s807_s13 }
  0xa4   : > { %p18_p2 = scmp.ge.s32.totalorder %s21_s17, 4   ;;  %s1119_s13 = smov %s811_s14 }
  0xa5   : > { %s1120_s14 = smov %s960_s9  ;;  %s1121_s15 = smov %s819_s16 }
  0xa6   : > { %s1122_s16 = smov %s1124_s18  ;;  %20 = sbr.rel (!%p18_p2) target bundleno = 10 (0xa), region = 96 }
  0xab   :  { %435 = vsyncpa [#allocation3], 1 }
  0xac   :  { %437 = vsyncpa [#allocation3 + $0x1], 1 }
  0xad   :  { %438 = vsyncpa [#allocation4], 1 }
  0xae   :  { %440 = vsyncpa [#allocation4 + $0x1], 1 }
  0xaf   :  { %441 = vsyncpa [#allocation5], 1 }
  0xb0   :  { %443 = vsyncpa [#allocation5 + $0x1], 1 }
  0xb1   :  { %444 = vsyncpa [#allocation7], 1 }

</bundles_post_ra>
